<compile_context>
chip_gen: v5e
topology: v5e:2x2
jax: 0.10.0
libtpu: 0.0.40
codegen_flags: <defaults>
</compile_context>

<pallas_src>
import functools

import jax
import jax.numpy as jnp
from jax.experimental import pallas as pl
from jax.experimental.pallas import tpu as pltpu


def _round_up(x, m):
    return ((x + m - 1) // m) * m


def _psrw_kernel(cost_ref, mesh_ref, ones_ref, pk_ref, out_ref, *,
                 r_priori2, r_lo2, r_hi2, ml_width_pow, use_std_dev):
    """cost_ref: (R, HW) native dtype ; mesh_ref: (2, HW) f32 shared y/x grid
    (resident); ones_ref: (HW, 1) f32 (resident MXU reduction RHS);
    pk_ref: (R, 2) f32 peak (y, x) ; out_ref: (R, 1) f32 un-normalized psrw."""
    cost = cost_ref[...].astype(jnp.float32)      # per-tile upcast (native-dtype DMA)
    my = mesh_ref[0:1, :]                         # (1, HW)
    mx = mesh_ref[1:2, :]                         # (1, HW)
    ones = ones_ref[...]                          # (HW, 1)
    py = pk_ref[:, 0:1]                           # (R, 1)  (exact: coords < 2^24)
    px = pk_ref[:, 1:2]                           # (R, 1)

    # squared distance to the peak (exact small-integer arithmetic in f32)
    dy = my - py
    dx = mx - px
    d2 = dy * dy + dx * dx                        # (R, HW)

    # ---- priori pass: side-lobe = pixels outside the priori disk -------------
    # counts & weighted sums go to the idle MXU as skinny matmuls vs ones(HW,1)
    pri = d2 > r_priori2
    n_pri = jnp.dot(jnp.where(pri, 1.0, 0.0), ones,
                    preferred_element_type=jnp.float32)            # (R, 1)
    s_pri = jnp.dot(jnp.where(pri, cost, 0.0), ones,
                    preferred_element_type=jnp.float32)            # (R, 1)
    cv_mean = s_pri / jnp.maximum(n_pri, 1.0)     # guard: disk covers whole image

    # ---- main-lobe width: closest pixel with cost <= mean, peak excluded -----
    # squared distances throughout; 1e4 == 100**2 sentinel (same as reference).
    keep = jnp.logical_and(cost <= cv_mean, d2 > 0.0)
    width2 = jnp.min(jnp.where(keep, d2, 1.0e4), axis=-1, keepdims=True)  # (R,1)
    width = jnp.sqrt(width2)                      # only sqrt, on the (R,1) vector

    # ---- adaptive side-lobe stats: single pass on mean-shifted values --------
    # clip the *squared* radius: clip(w,1.5,r_max+.5)^2 == clip(w^2, ...) exactly
    r2 = jnp.clip(width2, r_lo2, r_hi2)
    c_shift = cost - cv_mean                      # removes the common offset ->
    sl = d2 > r2                                  # no cancellation in S2-n*mu^2
    sl_c = jnp.where(sl, c_shift, 0.0)
    n_sl = jnp.dot(jnp.where(sl, 1.0, 0.0), ones,
                   preferred_element_type=jnp.float32)             # (R, 1)
    s1 = jnp.dot(sl_c, ones, preferred_element_type=jnp.float32)   # (R, 1)
    s2 = jnp.dot(sl_c * sl_c, ones, preferred_element_type=jnp.float32)

    n_safe = jnp.maximum(n_sl, 1.0)               # guard: empty side-lobe
    mu_shift = s1 / n_safe
    mean_sl = cv_mean + mu_shift
    var_sl = (jnp.maximum(s2 - n_sl * mu_shift * mu_shift, 0.0)
              / jnp.maximum(n_sl - 1.0, 1.0))
    if use_std_dev:
        var_sl = jnp.sqrt(var_sl + 1e-16)

    peaks = jnp.max(cost, axis=-1, keepdims=True)

    if ml_width_pow == 1:
        wpow = width
    elif ml_width_pow == 0:
        wpow = jnp.ones_like(width)
    else:
        wpow = width ** ml_width_pow

    out_ref[...] = (peaks - mean_sl) / (var_sl * wpow + 1e-16)


def saliency_evaluator_psrw(cost_volume, peak_coords, mesh,
                            mainlobe_window_radius_priori=1.5,
                            mainlobe_window_radius_max=4,
                            min_k=1, ml_width_pow=1,
                            detach_saliency=False, use_std_dev=False):
    """JAX/Pallas equivalent of SaliencyEvaluator_PSRW.forward."""
    assert min_k == 1  # TODO(synk): min_k > 1 needs an in-kernel top-k of distances.
    B, C, H, W = cost_volume.shape
    N, HW = B * C, H * W

    # Native dtype — no wrapper-side f32 cast (kernel upcasts per tile).
    cost = cost_volume.reshape(N, HW)
    pk = peak_coords.reshape(N, 2).astype(jnp.float32)    # tiny (N, 2)

    # The module's mesh is the pixel-coordinate grid broadcast over (B, C)
    # (peak_coords index directly into it), so pass ONE shared (2, HW) plane
    # that stays resident in VMEM instead of streaming B*C full-size copies.
    # TODO(synk): a genuinely per-(b, c) mesh would need a streamed (N, HW) plane.
    mesh_yx = jnp.stack(
        [jnp.asarray(mesh[0])[0, 0].reshape(HW),
         jnp.asarray(mesh[1])[0, 0].reshape(HW)], axis=0).astype(jnp.float32)
    ones_col = jnp.ones((HW, 1), jnp.float32)             # resident MXU reduction RHS

    # ---- generation-aware tile sizing ---------------------------------------
    try:
        vmem_cap = int(pltpu.get_tpu_info().vmem_capacity_bytes)
    except Exception:
        vmem_cap = 64 * 1024 * 1024
    # ~96 MiB budget on 128-MiB chips (v5e/v6e), ~48 MiB on 64-MiB-per-TC v7x.
    vmem_limit = min(vmem_cap * 3 // 4, 100 * 1024 * 1024)
    plane_budget = vmem_limit * 2 // 3

    in_isz = jnp.dtype(cost.dtype).itemsize
    # double-buffered input slab + ~6 live full-width f32 temporaries in-kernel
    per_row_bytes = 2 * HW * in_isz + 6 * HW * 4
    rows_vmem = max(8, (plane_budget // per_row_bytes) // 8 * 8)
    rows_tgt = max(8, ((8 * 1024 * 1024) // (HW * in_isz)) // 8 * 8)  # ~8 MiB slab/step
    rows = min(rows_vmem, rows_tgt, _round_up(N, 8))
    # megacore (v7x, 2 TC): keep >=2 grid steps whenever N allows it
    rows = max(8, min(rows, _round_up(-(-N // 2), 8)))

    n_blocks = -(-N // rows)   # ragged tail block handled by Pallas (no jnp.pad copy);
                               # tail rows are garbage but per-row and sliced off below.

    kernel = functools.partial(
        _psrw_kernel,
        r_priori2=float(mainlobe_window_radius_priori) ** 2,
        r_lo2=1.5 ** 2,
        r_hi2=(float(mainlobe_window_radius_max) + 0.5) ** 2,
        ml_width_pow=int(ml_width_pow),
        use_std_dev=bool(use_std_dev),
    )

    psrw = pl.pallas_call(
        kernel,
        out_shape=jax.ShapeDtypeStruct((n_blocks * rows, 1), jnp.float32),
        grid_spec=pltpu.PrefetchScalarGridSpec(
            num_scalar_prefetch=0,
            grid=(n_blocks,),
            in_specs=[
                pl.BlockSpec((rows, HW), lambda i: (i, 0)),   # streamed cost slab (native dtype)
                pl.BlockSpec((2, HW), lambda i: (0, 0)),      # shared mesh, resident
                pl.BlockSpec((HW, 1), lambda i: (0, 0)),      # ones column, resident
                pl.BlockSpec((rows, 2), lambda i: (i, 0)),    # packed peak (y, x)
            ],
            out_specs=pl.BlockSpec((rows, 1), lambda i: (i, 0)),
        ),
        compiler_params=pltpu.CompilerParams(
            dimension_semantics=("parallel",),        # rows independent; v7x 2-TC
            vmem_limit_bytes=int(vmem_limit)),
    )(cost, mesh_yx, ones_col, pk)

    psrw = psrw[:N, 0].reshape(B, C)
    saliency = psrw / (jnp.mean(psrw, axis=-1, keepdims=True) + 1e-8)
    if detach_saliency:
        saliency = jax.lax.stop_gradient(saliency)
    return saliency


def _psrw_reference(cost_volume, peak_coords, mesh,
                    r_priori=1.5, r_max=4, ml_width_pow=1):
    """Pure-JAX reference (two-pass variance), same math as the PyTorch module."""
    B, C, H, W = cost_volume.shape
    N, HW = B * C, H * W
    cost = cost_volume.reshape(N, HW).astype(jnp.float32)
    my = jnp.asarray(mesh[0]).reshape(N, HW).astype(jnp.float32)
    mx = jnp.asarray(mesh[1]).reshape(N, HW).astype(jnp.float32)
    pk = peak_coords.reshape(N, 2).astype(jnp.float32)
    d2 = (my - pk[:, 0:1]) ** 2 + (mx - pk[:, 1:2]) ** 2
    pri = (d2 > r_priori ** 2).astype(jnp.float32)
    cv_mean = jnp.sum(cost * pri, -1, keepdims=True) / jnp.sum(pri, -1, keepdims=True)
    keep = jnp.logical_and(cost <= cv_mean, d2 > 0.0)
    width2 = jnp.min(jnp.where(keep, d2, 1.0e4), -1, keepdims=True)
    width = jnp.sqrt(width2)
    r2 = jnp.clip(width2, 1.5 ** 2, (r_max + 0.5) ** 2)
    sl = (d2 > r2).astype(jnp.float32)
    n = jnp.sum(sl, -1, keepdims=True)
    mean = jnp.sum(cost * sl, -1, keepdims=True) / n
    var = jnp.sum(((cost - mean) * sl) ** 2, -1, keepdims=True) / (n - 1.0)
    peaks = jnp.max(cost, -1, keepdims=True)
    psrw = ((peaks - mean) / (var * width ** ml_width_pow + 1e-16)).reshape(B, C)
    return psrw / (jnp.mean(psrw, -1, keepdims=True) + 1e-8)


if __name__ == "__main__":
    key = jax.random.PRNGKey(0)
    B, C, H, W = 2, 4, 16, 16

    cost_volume = jax.random.uniform(key, (B, C, H, W), dtype=jnp.float32)

    # peak coords (y, x) = per-channel argmax of the cost map (typical usage)
    flat_idx = jnp.argmax(cost_volume.reshape(B, C, H * W), axis=-1)
    peak_coords = jnp.stack([flat_idx // W, flat_idx % W], axis=-1).astype(jnp.int32)

    # mesh = [y-grid, x-grid] broadcast over (B, C)
    yy, xx = jnp.meshgrid(jnp.arange(H), jnp.arange(W), indexing="ij")
    mesh = [jnp.broadcast_to(yy, (B, C, H, W)).astype(jnp.int32),
            jnp.broadcast_to(xx, (B, C, H, W)).astype(jnp.int32)]

    saliency = saliency_evaluator_psrw(cost_volume, peak_coords, mesh)
    saliency = jax.block_until_ready(saliency)

    ref = _psrw_reference(cost_volume, peak_coords, mesh)

    assert saliency.shape == (B, C)
    assert bool(jnp.all(jnp.isfinite(saliency)))
    assert bool(jnp.allclose(saliency, ref, rtol=1e-3, atol=1e-4))
    print("KERNEL_OK")
</pallas_src>

<mosaic_0001>
module attributes {stable_mosaic.version = 11 : i64} {
  func.func @_psrw_kernel(%arg0: i32, %arg1: memref<8x256xf32, #tpu.memory_space<vmem>>, %arg2: memref<2x256xf32, #tpu.memory_space<vmem>>, %arg3: memref<256x1xf32, #tpu.memory_space<vmem>>, %arg4: memref<8x2xf32, #tpu.memory_space<vmem>>, %arg5: memref<8x1xf32, #tpu.memory_space<vmem>>) attributes {dimension_semantics = [#tpu.dimension_semantics<parallel>], iteration_bounds = array<i64: 1>, scalar_prefetch = 0 : i64, scratch_operands = 0 : i64, tpu.core_type = #tpu.core_type<tc>, window_params = [{transform_indices = @transform_0, window_bounds = array<i64: 8, 256>}, {pipeline_mode = #tpu.pipeline_mode<synchronous>, transform_indices = @transform_1, window_bounds = array<i64: 2, 256>}, {pipeline_mode = #tpu.pipeline_mode<synchronous>, transform_indices = @transform_2, window_bounds = array<i64: 256, 1>}, {transform_indices = @transform_3, window_bounds = array<i64: 8, 2>}, {transform_indices = @transform_4, window_bounds = array<i64: 8, 1>}]} {
    %c0 = arith.constant 0 : index
    %c0_0 = arith.constant 0 : index
    %0 = vector.load %arg1[%c0, %c0_0] : memref<8x256xf32, #tpu.memory_space<vmem>>, vector<8x256xf32>
    %c0_1 = arith.constant 0 : index
    %c0_2 = arith.constant 0 : index
    %1 = vector.load %arg2[%c0_1, %c0_2] : memref<2x256xf32, #tpu.memory_space<vmem>>, vector<1x256xf32>
    %c1 = arith.constant 1 : index
    %c0_3 = arith.constant 0 : index
    %2 = vector.load %arg2[%c1, %c0_3] : memref<2x256xf32, #tpu.memory_space<vmem>>, vector<1x256xf32>
    %c0_4 = arith.constant 0 : index
    %c0_5 = arith.constant 0 : index
    %3 = vector.load %arg3[%c0_4, %c0_5] : memref<256x1xf32, #tpu.memory_space<vmem>>, vector<256x1xf32>
    %c0_6 = arith.constant 0 : index
    %c0_7 = arith.constant 0 : index
    %4 = vector.load %arg4[%c0_6, %c0_7] : memref<8x2xf32, #tpu.memory_space<vmem>>, vector<8x1xf32>
    %c0_8 = arith.constant 0 : index
    %c1_9 = arith.constant 1 : index
    %5 = vector.load %arg4[%c0_8, %c1_9] : memref<8x2xf32, #tpu.memory_space<vmem>>, vector<8x1xf32>
    %6 = vector.broadcast %1 : vector<1x256xf32> to vector<8x256xf32>
    %7 = vector.broadcast %4 : vector<8x1xf32> to vector<8x256xf32>
    %8 = arith.subf %6, %7 : vector<8x256xf32>
    %9 = vector.broadcast %2 : vector<1x256xf32> to vector<8x256xf32>
    %10 = vector.broadcast %5 : vector<8x1xf32> to vector<8x256xf32>
    %11 = arith.subf %9, %10 : vector<8x256xf32>
    %12 = arith.mulf %8, %8 : vector<8x256xf32>
    %13 = arith.mulf %11, %11 : vector<8x256xf32>
    %14 = arith.addf %12, %13 : vector<8x256xf32>
    %cst = arith.constant 2.250000e+00 : f32
    %15 = vector.broadcast %cst : f32 to vector<8x256xf32>
    %16 = arith.cmpf ogt, %14, %15 : vector<8x256xf32>
    %cst_10 = arith.constant 1.000000e+00 : f32
    %cst_11 = arith.constant 0.000000e+00 : f32
    %17 = vector.broadcast %cst_10 : f32 to vector<8x256xf32>
    %18 = vector.broadcast %cst_11 : f32 to vector<8x256xf32>
    %19 = arith.select %16, %17, %18 : vector<8x256xi1>, vector<8x256xf32>
    %cst_12 = arith.constant dense<0.000000e+00> : vector<8x1xf32>
    %20 = tpu.matmul %19, %3, %cst_12 {dimension_numbers = #tpu.dot_dimension_numbers<[1], [0], [0], [1], [0, 0, 1, 1], [], []>} : vector<8x256xf32>, vector<256x1xf32>, vector<8x1xf32> -> vector<8x1xf32>
    %cst_13 = arith.constant 0.000000e+00 : f32
    %21 = vector.broadcast %cst_13 : f32 to vector<8x256xf32>
    %22 = arith.select %16, %0, %21 : vector<8x256xi1>, vector<8x256xf32>
    %cst_14 = arith.constant dense<0.000000e+00> : vector<8x1xf32>
    %23 = tpu.matmul %22, %3, %cst_14 {dimension_numbers = #tpu.dot_dimension_numbers<[1], [0], [0], [1], [0, 0, 1, 1], [], []>} : vector<8x256xf32>, vector<256x1xf32>, vector<8x1xf32> -> vector<8x1xf32>
    %cst_15 = arith.constant 1.000000e+00 : f32
    %24 = vector.broadcast %cst_15 : f32 to vector<8x1xf32>
    %25 = arith.maximumf %20, %24 : vector<8x1xf32>
    %26 = arith.divf %23, %25 : vector<8x1xf32>
    %27 = vector.broadcast %26 : vector<8x1xf32> to vector<8x256xf32>
    %28 = arith.cmpf ole, %0, %27 : vector<8x256xf32>
    %cst_16 = arith.constant 0.000000e+00 : f32
    %29 = vector.broadcast %cst_16 : f32 to vector<8x256xf32>
    %30 = arith.cmpf ogt, %14, %29 : vector<8x256xf32>
    %31 = arith.andi %28, %30 : vector<8x256xi1>
    %cst_17 = arith.constant 1.000000e+04 : f32
    %32 = vector.broadcast %cst_17 : f32 to vector<8x256xf32>
    %33 = arith.select %31, %14, %32 : vector<8x256xi1>, vector<8x256xf32>
    %cst_18 = arith.constant dense<0x7F800000> : vector<8xf32>
    %34 = vector.multi_reduction <minimumf>, %33, %cst_18 [1] : vector<8x256xf32> to vector<8xf32>
    %35 = vector.shape_cast %34 : vector<8xf32> to vector<8x1xf32>
    %36 = math.sqrt %35 : vector<8x1xf32>
    %cst_19 = arith.constant 2.250000e+00 : f32
    %cst_20 = arith.constant 2.025000e+01 : f32
    %37 = vector.broadcast %cst_19 : f32 to vector<8x1xf32>
    %38 = arith.maximumf %37, %35 : vector<8x1xf32>
    %39 = vector.broadcast %cst_20 : f32 to vector<8x1xf32>
    %40 = arith.minimumf %39, %38 : vector<8x1xf32>
    %41 = vector.broadcast %26 : vector<8x1xf32> to vector<8x256xf32>
    %42 = arith.subf %0, %41 : vector<8x256xf32>
    %43 = vector.broadcast %40 : vector<8x1xf32> to vector<8x256xf32>
    %44 = arith.cmpf ogt, %14, %43 : vector<8x256xf32>
    %cst_21 = arith.constant 0.000000e+00 : f32
    %45 = vector.broadcast %cst_21 : f32 to vector<8x256xf32>
    %46 = arith.select %44, %42, %45 : vector<8x256xi1>, vector<8x256xf32>
    %cst_22 = arith.constant 1.000000e+00 : f32
    %cst_23 = arith.constant 0.000000e+00 : f32
    %47 = vector.broadcast %cst_22 : f32 to vector<8x256xf32>
    %48 = vector.broadcast %cst_23 : f32 to vector<8x256xf32>
    %49 = arith.select %44, %47, %48 : vector<8x256xi1>, vector<8x256xf32>
    %cst_24 = arith.constant dense<0.000000e+00> : vector<8x1xf32>
    %50 = tpu.matmul %49, %3, %cst_24 {dimension_numbers = #tpu.dot_dimension_numbers<[1], [0], [0], [1], [0, 0, 1, 1], [], []>} : vector<8x256xf32>, vector<256x1xf32>, vector<8x1xf32> -> vector<8x1xf32>
    %cst_25 = arith.constant dense<0.000000e+00> : vector<8x1xf32>
    %51 = tpu.matmul %46, %3, %cst_25 {dimension_numbers = #tpu.dot_dimension_numbers<[1], [0], [0], [1], [0, 0, 1, 1], [], []>} : vector<8x256xf32>, vector<256x1xf32>, vector<8x1xf32> -> vector<8x1xf32>
    %52 = arith.mulf %46, %46 : vector<8x256xf32>
    %cst_26 = arith.constant dense<0.000000e+00> : vector<8x1xf32>
    %53 = tpu.matmul %52, %3, %cst_26 {dimension_numbers = #tpu.dot_dimension_numbers<[1], [0], [0], [1], [0, 0, 1, 1], [], []>} : vector<8x256xf32>, vector<256x1xf32>, vector<8x1xf32> -> vector<8x1xf32>
    %cst_27 = arith.constant 1.000000e+00 : f32
    %54 = vector.broadcast %cst_27 : f32 to vector<8x1xf32>
    %55 = arith.maximumf %50, %54 : vector<8x1xf32>
    %56 = arith.divf %51, %55 : vector<8x1xf32>
    %57 = arith.addf %26, %56 : vector<8x1xf32>
    %58 = arith.mulf %50, %56 : vector<8x1xf32>
    %59 = arith.mulf %58, %56 : vector<8x1xf32>
    %60 = arith.subf %53, %59 : vector<8x1xf32>
    %cst_28 = arith.constant 0.000000e+00 : f32
    %61 = vector.broadcast %cst_28 : f32 to vector<8x1xf32>
    %62 = arith.maximumf %60, %61 : vector<8x1xf32>
    %cst_29 = arith.constant 1.000000e+00 : f32
    %63 = vector.broadcast %cst_29 : f32 to vector<8x1xf32>
    %64 = arith.subf %50, %63 : vector<8x1xf32>
    %cst_30 = arith.constant 1.000000e+00 : f32
    %65 = vector.broadcast %cst_30 : f32 to vector<8x1xf32>
    %66 = arith.maximumf %64, %65 : vector<8x1xf32>
    %67 = arith.divf %62, %66 : vector<8x1xf32>
    %cst_31 = arith.constant dense<0xFF800000> : vector<8xf32>
    %68 = vector.multi_reduction <maximumf>, %0, %cst_31 [1] : vector<8x256xf32> to vector<8xf32>
    %69 = vector.shape_cast %68 : vector<8xf32> to vector<8x1xf32>
    %70 = arith.subf %69, %57 : vector<8x1xf32>
    %71 = arith.mulf %67, %36 : vector<8x1xf32>
    %cst_32 = arith.constant 1.000000e-16 : f32
    %72 = vector.broadcast %cst_32 : f32 to vector<8x1xf32>
    %73 = arith.addf %71, %72 : vector<8x1xf32>
    %74 = arith.divf %70, %73 : vector<8x1xf32>
    %c0_33 = arith.constant 0 : index
    %c0_34 = arith.constant 0 : index
    %75 = vector.load %arg5[%c0_33, %c0_34] : memref<8x1xf32, #tpu.memory_space<vmem>>, vector<8x1xf32>
    tpu.vector_store %arg5[%c0_33, %c0_34], %74 {strides = array<i32>} : memref<8x1xf32, #tpu.memory_space<vmem>>, vector<8x1xf32>,
    return
  }
  func.func @transform_0(%arg0: i32) -> (i32, i32) {
    %c0_i32 = arith.constant 0 : i32
    %c0_i32_0 = arith.constant 0 : i32
    return %arg0, %c0_i32 : i32, i32
  }
  func.func @transform_1(%arg0: i32) -> (i32, i32) {
    %c0_i32 = arith.constant 0 : i32
    %c0_i32_0 = arith.constant 0 : i32
    %c0_i32_1 = arith.constant 0 : i32
    return %c0_i32, %c0_i32_0 : i32, i32
  }
  func.func @transform_2(%arg0: i32) -> (i32, i32) {
    %c0_i32 = arith.constant 0 : i32
    %c0_i32_0 = arith.constant 0 : i32
    %c0_i32_1 = arith.constant 0 : i32
    return %c0_i32, %c0_i32_0 : i32, i32
  }
  func.func @transform_3(%arg0: i32) -> (i32, i32) {
    %c0_i32 = arith.constant 0 : i32
    %c0_i32_0 = arith.constant 0 : i32
    return %arg0, %c0_i32 : i32, i32
  }
  func.func @transform_4(%arg0: i32) -> (i32, i32) {
    %c0_i32 = arith.constant 0 : i32
    %c0_i32_0 = arith.constant 0 : i32
    return %arg0, %c0_i32 : i32, i32
  }
}

</mosaic_0001>

<bundles_post_ra>
// kernel: tpu_custom_call.1
= control target key start
LH: loop header
LB: loop body
LE: loop exit
PB: predicated region body
PF: predicated region fallthrough
CT: control target
= control target key end

     0   :  { %v438_v0 = vmov 0   ;;  %v439_v12 = vmov 1   ;;  %v440_v55 = vmov 1.0   ;;  %s846_s3 = inlined_call_operand.vmem [shape: f32[8,2], index: 3, kind: input, shape index: {}]   ;;  %s847_s2 = inlined_call_operand.vmem [shape: f32[256,1], index: 2, kind: input, shape index: {}]   ;;  %s848_s1 = inlined_call_operand.vmem [shape: f32[2,256], index: 1, kind: input, shape index: {}]   ;;  %s849_s0 = inlined_call_operand.vmem [shape: f32[8,256], index: 0, kind: input, shape index: {}]   ;;  %s850_s4 = inlined_call_operand.vmem [shape: f32[8,1], index: 4, kind: output, shape index: {}]  }
   0x1   :  { %424 = vset.pattern.permute.xlu0 %v438_v0  ;;  %v54_v1 = vld [vmem:[%s846_s3] sm:$0xff]  ;;  %v472_v2 = vld [vmem:[%s847_s2 + $0x78] sm:$0xff]  ;;  %426 = vset.pattern.permute.xlu1 %v438_v0  ;;  %v483_v4 = vld [vmem:[%s847_s2 + $0x70] sm:$0xff] }
   0x2   :  { %v477_v3 = vld [vmem:[%s847_s2 + $0xf8] sm:$0xff]  ;;  %62 = vperm.xlu0 %424, %v54_v1   ;;  %88 = vmatpush.msra.mxu0 %v472_v2  ;;  %v488_v5 = vld [vmem:[%s847_s2 + $0xf0] sm:$0xff]  ;;  %v495_v6 = vld [vmem:[%s847_s2 + $0x68] sm:$0xff] }
   0x3   :  { %108 = vmatpush.msra.mxu1 %v477_v3  ;;  %130 = vmatpush.msra.mxu2 %v472_v2  ;;  %v502_v7 = vld [vmem:[%s847_s2 + $0xe8] sm:$0xff]  ;;  %v509_v8 = vld [vmem:[%s847_s2 + $0x60] sm:$0xff]  ;;  %v525_v10 = vld [vmem:[%s847_s2 + $0x58] sm:$0xff] }
   0x4   :  { %150 = vmatpush.msra.mxu3 %v477_v3  ;;  %89 = vmatpush.msra.mxu0 %v483_v4  ;;  %v516_v9 = vld [vmem:[%s847_s2 + $0xe0] sm:$0xff]  ;;  %v532_v11 = vld [vmem:[%s847_s2 + $0xd8] sm:$0xff]  ;;  %v538_v13 = vld [vmem:[%s847_s2 + $0x50] sm:$0xff] }
   0x5   :  { %109 = vmatpush.msra.mxu1 %v488_v5  ;;  %131 = vmatpush.msra.mxu2 %v483_v4  ;;  %v544_v14 = vld [vmem:[%s847_s2 + $0xd0] sm:$0xff]  ;;  %v551_v15 = vld [vmem:[%s847_s2 + $0x48] sm:$0xff]  ;;  %v570_v17 = vld [vmem:[%s847_s2 + $0x40] sm:$0xff] }
   0x6   :  { %151 = vmatpush.msra.mxu3 %v488_v5  ;;  %90 = vmatpush.msra.mxu0 %v495_v6  ;;  %v558_v16 = vld [vmem:[%s847_s2 + $0xc8] sm:$0xff]  ;;  %v575_v18 = vld [vmem:[%s847_s2 + $0xc0] sm:$0xff]  ;;  %v584_v19 = vld [vmem:[%s847_s2 + $0x38] sm:$0xff] }
   0x7   :  { %110 = vmatpush.msra.mxu1 %v502_v7  ;;  %132 = vmatpush.msra.mxu2 %v495_v6  ;;  %v589_v20 = vld [vmem:[%s847_s2 + $0xb8] sm:$0xff]  ;;  %v598_v21 = vld [vmem:[%s847_s2 + $0x30] sm:$0xff]  ;;  %v608_v23 = vld [vmem:[%s847_s2 + $0x28] sm:$0xff] }
   0x8   :  { %152 = vmatpush.msra.mxu3 %v502_v7  ;;  %91 = vmatpush.msra.mxu0 %v509_v8  ;;  %v603_v22 = vld [vmem:[%s847_s2 + $0xb0] sm:$0xff]  ;;  %v615_v24 = vld [vmem:[%s847_s2 + $0xa8] sm:$0xff]  ;;  %v622_v25 = vld [vmem:[%s847_s2 + $0x20] sm:$0xff] }
   0x9   :  { %111 = vmatpush.msra.mxu1 %v516_v9  ;;  %133 = vmatpush.msra.mxu2 %v509_v8  ;;  %v627_v26 = vld [vmem:[%s847_s2 + $0xa0] sm:$0xff]  ;;  %v640_v27 = vld [vmem:[%s847_s2 + $0x18] sm:$0xff]  ;;  %v654_v29 = vld [vmem:[%s847_s2 + $0x10] sm:$0xff] }
   0xa   :  { %425 = vset.pattern.permute.xlu0 %v439_v12  ;;  %153 = vmatpush.msra.mxu3 %v516_v9  ;;  %v645_v28 = vld [vmem:[%s847_s2 + $0x98] sm:$0xff]  ;;  %v659_v30 = vld [vmem:[%s847_s2 + $0x90] sm:$0xff]  ;;  %v668_v31 = vld [vmem:[%s847_s2 + $0x8] sm:$0xff] }
   0xb   :  { %73 = vperm.xlu0 %425, %v54_v1   ;;  %92 = vmatpush.msra.mxu0 %v525_v10  ;;  %v673_v32 = vld [vmem:[%s847_s2 + $0x88] sm:$0xff]  ;;  %v680_v33 = vld [vmem:[%s847_s2] sm:$0xff] }
   0xc   :  { %112 = vmatpush.msra.mxu1 %v532_v11  ;;  %134 = vmatpush.msra.mxu2 %v525_v10  ;;  %v685_v34 = vld [vmem:[%s847_s2 + $0x80] sm:$0xff]  ;;  %v769_v54 = vld [vmem:[%s849_s0 + $0x8] sm:$0xff] }
   0xd   :  { %154 = vmatpush.msra.mxu3 %v532_v11  ;;  %93 = vmatpush.msra.mxu0 %v538_v13  ;;  %v19_v36 = vld [vmem:[%s848_s1] ss:$2 sm:$0x3]  ;;  %v411_v38 = vld [vmem:[%s848_s1 + $0x1] ss:$2 sm:$0x3] }
   0xe   :  { %113 = vmatpush.msra.mxu1 %v544_v14  ;;  %135 = vmatpush.msra.mxu2 %v538_v13  ;;  %v56_v37 = vperm.slane %v19_v36, 0  ;;  %v57_v39 = vperm.slane %v19_v36, 1  ;;  %v68_v40 = vperm.slane %v411_v38, 0  ;;  %v69_v41 = vperm.slane %v411_v38, 1  ;;  %v764_v53 = vld [vmem:[%s849_s0] sm:$0xff] }
   0xf   :  { %155 = vmatpush.msra.mxu3 %v544_v14  ;;  %94 = vmatpush.msra.mxu0 %v551_v15 }
  0x10   :  { %114 = vmatpush.msra.mxu1 %v558_v16  ;;  %136 = vmatpush.msra.mxu2 %v551_v15 }
  0x11   :  { %156 = vmatpush.msra.mxu3 %v558_v16  ;;  %95 = vmatpush.msra.mxu0 %v570_v17 }
  0x12   :  { %115 = vmatpush.msra.mxu1 %v575_v18  ;;  %137 = vmatpush.msra.mxu2 %v570_v17 }
  0x13   :  { %427 = vset.pattern.permute.xlu0 %v438_v0  ;;  %157 = vmatpush.msra.mxu3 %v575_v18 }
  0x14   :  { %96 = vmatpush.msra.mxu0 %v584_v19  ;;  %116 = vmatpush.msra.mxu1 %v589_v20 }
  0x15   :  { %138 = vmatpush.msra.mxu2 %v584_v19  ;;  %158 = vmatpush.msra.mxu3 %v589_v20 }
  0x16   :  { %97 = vmatpush.msra.mxu0 %v598_v21  ;;  %117 = vmatpush.msra.mxu1 %v603_v22 }
  0x17   :  { %139 = vmatpush.msra.mxu2 %v598_v21  ;;  %159 = vmatpush.msra.mxu3 %v603_v22 }
  0x18   :  { %98 = vmatpush.msra.mxu0 %v608_v23  ;;  %118 = vmatpush.msra.mxu1 %v615_v24 }
  0x19   :  { %140 = vmatpush.msra.mxu2 %v608_v23  ;;  %160 = vmatpush.msra.mxu3 %v615_v24 }
  0x1a   :  { %99 = vmatpush.msra.mxu0 %v622_v25  ;;  %119 = vmatpush.msra.mxu1 %v627_v26 }
  0x1b   :  { %141 = vmatpush.msra.mxu2 %v622_v25  ;;  %161 = vmatpush.msra.mxu3 %v627_v26 }
  0x1c   :  { %100 = vmatpush.msra.mxu0 %v640_v27  ;;  %120 = vmatpush.msra.mxu1 %v645_v28 }
  0x1d   :  { %142 = vmatpush.msra.mxu2 %v640_v27  ;;  %162 = vmatpush.msra.mxu3 %v645_v28 }
  0x1e   :  { %101 = vmatpush.msra.mxu0 %v654_v29  ;;  %121 = vmatpush.msra.mxu1 %v659_v30 }
  0x1f   :  { %143 = vmatpush.msra.mxu2 %v654_v29  ;;  %163 = vmatpush.msra.mxu3 %v659_v30 }
  0x20   :  { %102 = vmatpush.msra.mxu0 %v668_v31  ;;  %122 = vmatpush.msra.mxu1 %v673_v32 }
  0x21   :  { %144 = vmatpush.msra.mxu2 %v668_v31  ;;  %164 = vmatpush.msra.mxu3 %v673_v32 }
  0x22   :  { %103 = vmatpush.msra.mxu0 %v680_v33  ;;  %123 = vmatpush.msra.mxu1 %v685_v34 }
  0x23   :  { %145 = vmatpush.msra.mxu2 %v680_v33  ;;  %165 = vmatpush.msra.mxu3 %v685_v34 }
  0x24   :  { %224 = vmatpush.msrb.mxu0 %v472_v2  ;;  %244 = vmatpush.msrb.mxu1 %v477_v3 }
  0x25   :  { %264 = vmatpush.msrb.mxu2 %v472_v2  ;;  %284 = vmatpush.msrb.mxu3 %v477_v3 }
  0x26   :  { %225 = vmatpush.msrb.mxu0 %v483_v4  ;;  %245 = vmatpush.msrb.mxu1 %v488_v5 }
  0x27   :  { %265 = vmatpush.msrb.mxu2 %v483_v4  ;;  %285 = vmatpush.msrb.mxu3 %v488_v5 }
  0x28   :  { %226 = vmatpush.msrb.mxu0 %v495_v6  ;;  %246 = vmatpush.msrb.mxu1 %v502_v7 }
  0x29   :  { %266 = vmatpush.msrb.mxu2 %v495_v6  ;;  %286 = vmatpush.msrb.mxu3 %v502_v7 }
  0x2a   :  { %227 = vmatpush.msrb.mxu0 %v509_v8  ;;  %247 = vmatpush.msrb.mxu1 %v516_v9 }
  0x2b   :  { %267 = vmatpush.msrb.mxu2 %v509_v8  ;;  %287 = vmatpush.msrb.mxu3 %v516_v9 }
  0x2c   :  { %228 = vmatpush.msrb.mxu0 %v525_v10  ;;  %248 = vmatpush.msrb.mxu1 %v532_v11 }
  0x2d   :  { %268 = vmatpush.msrb.mxu2 %v525_v10  ;;  %288 = vmatpush.msrb.mxu3 %v532_v11 }
  0x2e   :  { %229 = vmatpush.msrb.mxu0 %v538_v13  ;;  %249 = vmatpush.msrb.mxu1 %v544_v14 }
  0x2f   :  { %269 = vmatpush.msrb.mxu2 %v538_v13  ;;  %289 = vmatpush.msrb.mxu3 %v544_v14 }
  0x30   :  { %230 = vmatpush.msrb.mxu0 %v551_v15  ;;  %250 = vmatpush.msrb.mxu1 %v558_v16 }
  0x31   :  { %270 = vmatpush.msrb.mxu2 %v551_v15  ;;  %290 = vmatpush.msrb.mxu3 %v558_v16 }
  0x32   :  { %231 = vmatpush.msrb.mxu0 %v570_v17  ;;  %251 = vmatpush.msrb.mxu1 %v575_v18 }
  0x33   :  { %271 = vmatpush.msrb.mxu2 %v570_v17  ;;  %291 = vmatpush.msrb.mxu3 %v575_v18 }
  0x34   :  { %232 = vmatpush.msrb.mxu0 %v584_v19  ;;  %252 = vmatpush.msrb.mxu1 %v589_v20 }
  0x35   :  { %272 = vmatpush.msrb.mxu2 %v584_v19  ;;  %292 = vmatpush.msrb.mxu3 %v589_v20 }
  0x36   :  { %233 = vmatpush.msrb.mxu0 %v598_v21  ;;  %253 = vmatpush.msrb.mxu1 %v603_v22 }
  0x37   :  { %273 = vmatpush.msrb.mxu2 %v598_v21  ;;  %293 = vmatpush.msrb.mxu3 %v603_v22 }
  0x38   :  { %234 = vmatpush.msrb.mxu0 %v608_v23  ;;  %254 = vmatpush.msrb.mxu1 %v615_v24 }
  0x39   :  { %274 = vmatpush.msrb.mxu2 %v608_v23  ;;  %294 = vmatpush.msrb.mxu3 %v615_v24 }
  0x3a   :  { %235 = vmatpush.msrb.mxu0 %v622_v25  ;;  %255 = vmatpush.msrb.mxu1 %v627_v26 }
  0x3b   :  { %275 = vmatpush.msrb.mxu2 %v622_v25  ;;  %295 = vmatpush.msrb.mxu3 %v627_v26 }
  0x3c   :  { %236 = vmatpush.msrb.mxu0 %v640_v27  ;;  %256 = vmatpush.msrb.mxu1 %v645_v28 }
  0x3d   :  { %276 = vmatpush.msrb.mxu2 %v640_v27  ;;  %296 = vmatpush.msrb.mxu3 %v645_v28 }
  0x3e   :  { %237 = vmatpush.msrb.mxu0 %v654_v29  ;;  %257 = vmatpush.msrb.mxu1 %v659_v30 }
  0x3f   :  { %277 = vmatpush.msrb.mxu2 %v654_v29  ;;  %297 = vmatpush.msrb.mxu3 %v659_v30 }
  0x40   :  { %238 = vmatpush.msrb.mxu0 %v668_v31  ;;  %258 = vmatpush.msrb.mxu1 %v673_v32 }
  0x41   :  { %278 = vmatpush.msrb.mxu2 %v668_v31  ;;  %298 = vmatpush.msrb.mxu3 %v673_v32 }
  0x42   :  { %239 = vmatpush.msrb.mxu0 %v680_v33  ;;  %259 = vmatpush.msrb.mxu1 %v685_v34 }
  0x43   :  { %279 = vmatpush.msrb.mxu2 %v680_v33  ;;  %299 = vmatpush.msrb.mxu3 %v685_v34 }
  0x74   :  { %v63_v35 = vpop.permute.xlu0 %62 }
  0x75   :  { %v65_v42 = vsub.f32 %v56_v37, %v63_v35  ;;  %v66_v43 = vsub.f32 %v57_v39, %v63_v35 }
  0x77   :  { %v78_v47 = vmul.f32 %v65_v42, %v65_v42  ;;  %v79_v48 = vmul.f32 %v66_v43, %v66_v43 }
  0x7d   :  { %v74_v44 = vpop.permute.xlu0 %73 }
  0x7e   :  { %v76_v45 = vsub.f32 %v68_v40, %v74_v44  ;;  %v77_v46 = vsub.f32 %v69_v41, %v74_v44 }
  0x80   :  { %v80_v49 = vmul.f32 %v76_v45, %v76_v45  ;;  %v81_v50 = vmul.f32 %v77_v46, %v77_v46 }
  0x82   :  { %v755_v51 = vadd.f32 %v80_v49, %v78_v47  ;;  %v757_v52 = vadd.f32 %v81_v50, %v79_v48 }
  0x84   :  { %vm84_vm0 = vcmp.gt.f32.partialorder %v755_v51, 2.25  ;;  %vm85_vm1 = vcmp.gt.f32.partialorder %v757_v52, 2.25  ;;  %vm193_vm8 = vcmp.gt.f32.partialorder %v755_v51, 0.0  ;;  %vm194_vm9 = vcmp.gt.f32.partialorder %v757_v52, 0.0 }
  0x85   :  { %412 = vmatmul.msk.f32.vlgmr.msra.gmra.mxu0 %vm84_vm0, %v440_v55  ;;  %413 = vmatmul.msk.f32.vlgmr.msra.gmra.mxu1 %vm85_vm1, %v440_v55 }
  0x86   :  { %414 = vmatmul.msk.f32.vlgmr.msra.gmra.mxu2 %vm84_vm0, %v764_v53  ;;  %415 = vmatmul.msk.f32.vlgmr.msra.gmra.mxu3 %vm85_vm1, %v769_v54 }
  0x87   :  { %306 = vmatpush.msra.mxu0 %v472_v2  ;;  %326 = vmatpush.msra.mxu1 %v477_v3 }
  0x89   :  { %307 = vmatpush.msra.mxu0 %v483_v4  ;;  %327 = vmatpush.msra.mxu1 %v488_v5 }
  0x8b   :  { %308 = vmatpush.msra.mxu0 %v495_v6  ;;  %328 = vmatpush.msra.mxu1 %v502_v7 }
  0x8d   :  { %309 = vmatpush.msra.mxu0 %v509_v8  ;;  %329 = vmatpush.msra.mxu1 %v516_v9 }
  0x8f   :  { %310 = vmatpush.msra.mxu0 %v525_v10  ;;  %330 = vmatpush.msra.mxu1 %v532_v11 }
  0x91   :  { %311 = vmatpush.msra.mxu0 %v538_v13  ;;  %331 = vmatpush.msra.mxu1 %v544_v14  ;;  %v384_v14 = vmax.f32 %v764_v53, %v769_v54 }
  0x93   :  { %312 = vmatpush.msra.mxu0 %v551_v15  ;;  %332 = vmatpush.msra.mxu1 %v558_v16 }
  0x94   :  { %385 = vmax.xlane.f32.xlu2 %v384_v14 }
  0x95   :  { %313 = vmatpush.msra.mxu0 %v570_v17  ;;  %333 = vmatpush.msra.mxu1 %v575_v18 }
  0x97   :  { %314 = vmatpush.msra.mxu0 %v584_v19  ;;  %334 = vmatpush.msra.mxu1 %v589_v20 }
  0x99   :  { %315 = vmatpush.msra.mxu0 %v598_v21  ;;  %335 = vmatpush.msra.mxu1 %v603_v22 }
  0x9b   :  { %316 = vmatpush.msra.mxu0 %v608_v23  ;;  %336 = vmatpush.msra.mxu1 %v615_v24 }
  0x9d   :  { %317 = vmatpush.msra.mxu0 %v622_v25  ;;  %337 = vmatpush.msra.mxu1 %v627_v26 }
  0x9f   :  { %318 = vmatpush.msra.mxu0 %v640_v27  ;;  %338 = vmatpush.msra.mxu1 %v645_v28 }
  0xa1   :  { %319 = vmatpush.msra.mxu0 %v654_v29  ;;  %339 = vmatpush.msra.mxu1 %v659_v30 }
  0xa3   :  { %320 = vmatpush.msra.mxu0 %v668_v31  ;;  %340 = vmatpush.msra.mxu1 %v673_v32 }
  0xa5   :  { %321 = vmatpush.msra.mxu0 %v680_v33  ;;  %341 = vmatpush.msra.mxu1 %v685_v34 }
 0x102   :  { %v105_v56 = vpop.f32.mrf.mxu0  ;;  %v125_v57 = vpop.f32.mrf.mxu1 }
 0x103   :  { %v126_v58 = vadd.f32 %v125_v57, %v105_v56 }
 0x105   :  { %v170_v59 = vmax.f32 %v126_v58, 1.0 }
 0x107   :  { %428 = vrcp.f32 %v170_v59  ;;  %v182_v63 = vand.u32 2147483648, %v170_v59  ;;  %v180_v1 = vand.u32 2147483647, %v170_v59  ;;  %vm176_vm3 = vweird.f32 %v170_v59 }
 0x109   :  { %v147_v2 = vpop.f32.mrf.mxu2  ;;  %v167_v3 = vpop.f32.mrf.mxu3  ;;  %v183_v5 = vor.u32 1.1754944e-38, %v182_v63  ;;  %vm181_vm5 = vcmp.eq.f32.partialorder %v180_v1, 8.507059e+37 }
 0x10a   :  { %v168_v6 = vadd.f32 %v167_v3, %v147_v2 }
 0x10d   :  { %v429_v60 = vpop.eup %428 }
 0x10e   :  { %v172_v61 = vmul.f32 %v429_v60, %v170_v59  ;;  %vm177_vm2 = vweird.f32 %v429_v60 }
 0x10f   :  { %vm178_vm4 = vmor %vm176_vm3, %vm177_vm2 }
 0x110   :  { %v173_v62 = vsub.f32 1.0, %v172_v61 }
 0x112   :  { %v174_v0 = vmul.f32 %v429_v60, %v173_v62 }
 0x114   :  { %v175_v4 = vadd.f32 %v429_v60, %v174_v0 }
 0x116   :  { %v179_v7 = vsel %vm178_vm4, %v429_v60, %v175_v4 }
 0x117   :  { %v184_v8 = vsel %vm181_vm5, %v183_v5, %v179_v7 }
 0x118   :  { %v815_v9 = vmul.f32 %v184_v8, %v168_v6 }
 0x11a   :  { %188 = vperm.xlu1 %426, %v815_v9  }
 0x18c   :  { %v189_v10 = vpop.permute.xlu1 %188 }
 0x18d   :  { %vm191_vm6 = vcmp.le.f32.partialorder %v764_v53, %v189_v10  ;;  %vm192_vm7 = vcmp.le.f32.partialorder %v769_v54, %v189_v10  ;;  %v216_v18 = vsub.f32 %v764_v53, %v189_v10  ;;  %v217_v19 = vsub.f32 %v769_v54, %v189_v10 }
 0x18e   :  { %vm195_vm10 = vmand %vm191_vm6, %vm193_vm8 }
 0x18f   :  { %vm196_vm11 = vmand %vm192_vm7, %vm194_vm9  ;;  %v197_v11 = vsel %vm195_vm10, %v755_v51, 10000.0 }
 0x190   :  { %v198_v12 = vsel %vm196_vm11, %v757_v52, 10000.0 }
 0x191   :  { %v199_v13 = vmin.f32 %v197_v11, %v198_v12 }
 0x193   :  { %200 = vmin.xlane.f32.xlu1 %v199_v13 }
 0x206   :  { %v826_v15 = vpop.xlane.xlu1 %200 }
 0x207   :  { %v214_v16 = vmax.f32 %v826_v15, 2.25  ;;  %430 = vrsqrt.f32 %v826_v15  ;;  %vm209_vm5 = vcmp.eq.f32.partialorder %v826_v15, inf  ;;  %v212_v4 = vand.u32 2147483648, %v826_v15 }
 0x208   :  { %vm211_vm7 = vcmp.eq.f32.partialorder %v826_v15, 0.0 }
 0x209   :  { %v215_v17 = vmin.f32 %v214_v16, 20.25 }
 0x20b   :  { %vm218_vm12 = vcmp.gt.f32.partialorder %v755_v51, %v215_v17  ;;  %vm219_vm13 = vcmp.gt.f32.partialorder %v757_v52, %v215_v17 }
 0x20c   :  { %416 = vmatmul.msk.f32.vlgmr.msrb.gmra.mxu0 %vm218_vm12, %v440_v55  ;;  %417 = vmatmul.msk.f32.vlgmr.msrb.gmra.mxu1 %vm219_vm13, %v440_v55  ;;  %v220_v20 = vsel %vm218_vm12, %v216_v18, 0.0  ;;  %v221_v21 = vsel %vm219_vm13, %v217_v19, 0.0 }
 0x20d   :  { %418 = vmatmul.msk.f32.vlgmr.msrb.gmra.mxu2 %vm218_vm12, %v216_v18  ;;  %419 = vmatmul.msk.f32.vlgmr.msrb.gmra.mxu3 %vm219_vm13, %v217_v19  ;;  %v304_v22 = vmul.f32 %v220_v20, %v220_v20  ;;  %v305_v23 = vmul.f32 %v221_v21, %v221_v21  ;;  %v431_v27 = vpop.eup %430  ;;  %v386_v19 = vpop.xlane.xlu2 %385  ;;  %vm405_vm12 = vcmask 7168  }
 0x20e   :  { %v203_v30 = vmul.f32 %v431_v27, %v826_v15 }
 0x210   :  { %v204_v32 = vmul.f32 %v431_v27, %v203_v30 }
 0x212   :  { %v205_v36 = vmul.f32 0.5, %v204_v32 }
 0x214   :  { %322 = vmatmul.f32.vlgmr.msra.gmra.mxu0 %v304_v22  ;;  %342 = vmatmul.f32.vlgmr.msra.gmra.mxu1 %v305_v23  ;;  %v206_v43 = vsub.f32 1.5, %v205_v36 }
 0x216   :  { %v207_v52 = vmul.f32 %v431_v27, %v206_v43 }
 0x218   :  { %v208_v58 = vmul.f32 %v207_v52, %v826_v15 }
 0x21a   :  { %v210_v2 = vsel %vm209_vm5, %v826_v15, %v208_v58 }
 0x21b   :  { %v213_v7 = vsel %vm211_vm7, %v212_v4, %v210_v2 }
 0x289   :  { %v241_v24 = vpop.f32.mrf.mxu0  ;;  %v261_v25 = vpop.f32.mrf.mxu1 }
 0x28a   :  { %v262_v26 = vadd.f32 %v261_v25, %v241_v24 }
 0x28c   :  { %v346_v28 = vmax.f32 %v262_v26, 1.0  ;;  %v420_v29 = vadd.f32 -1.0, %v262_v26 }
 0x28e   :  { %432 = vrcp.f32 %v346_v28  ;;  %v368_v31 = vmax.f32 %v420_v29, 1.0  ;;  %v358_v39 = vand.u32 2147483648, %v346_v28  ;;  %v356_v41 = vand.u32 2147483647, %v346_v28 }
 0x28f   :  { %vm352_vm15 = vweird.f32 %v346_v28 }
 0x290   :  { %434 = vrcp.f32 %v368_v31  ;;  %v281_v44 = vpop.f32.mrf.mxu2  ;;  %v301_v45 = vpop.f32.mrf.mxu3  ;;  %v359_v47 = vor.u32 1.1754944e-38, %v358_v39  ;;  %vm357_vm1 = vcmp.eq.f32.partialorder %v356_v41, 8.507059e+37  ;;  %v380_v59 = vand.u32 2147483648, %v368_v31 }
 0x291   :  { %v302_v48 = vadd.f32 %v301_v45, %v281_v44  ;;  %v323_v54 = vpop.f32.mrf.mxu0  ;;  %v343_v55 = vpop.f32.mrf.mxu1  ;;  %vm374_vm3 = vweird.f32 %v368_v31  ;;  %v378_v62 = vand.u32 2147483647, %v368_v31 }
 0x292   :  { %v344_v60 = vadd.f32 %v343_v55, %v323_v54  ;;  %v381_v1 = vor.u32 1.1754944e-38, %v380_v59 }
 0x293   :  { %vm379_vm6 = vcmp.eq.f32.partialorder %v378_v62, 8.507059e+37 }
 0x294   :  { %v433_v33 = vpop.eup %432 }
 0x295   :  { %v348_v34 = vmul.f32 %v433_v33, %v346_v28  ;;  %vm353_vm14 = vweird.f32 %v433_v33 }
 0x296   :  { %v435_v35 = vpop.eup %434  ;;  %vm354_vm0 = vmor %vm352_vm15, %vm353_vm14 }
 0x297   :  { %v349_v37 = vsub.f32 1.0, %v348_v34  ;;  %v370_v38 = vmul.f32 %v435_v35, %v368_v31  ;;  %vm375_vm2 = vweird.f32 %v435_v35 }
 0x298   :  { %vm376_vm4 = vmor %vm374_vm3, %vm375_vm2 }
 0x299   :  { %v350_v40 = vmul.f32 %v433_v33, %v349_v37  ;;  %v371_v42 = vsub.f32 1.0, %v370_v38 }
 0x29b   :  { %v351_v46 = vadd.f32 %v433_v33, %v350_v40  ;;  %v372_v50 = vmul.f32 %v435_v35, %v371_v42 }
 0x29d   :  { %v355_v49 = vsel %vm354_vm0, %v433_v33, %v351_v46  ;;  %v373_v57 = vadd.f32 %v435_v35, %v372_v50 }
 0x29e   :  { %v360_v51 = vsel %vm357_vm1, %v359_v47, %v355_v49 }
 0x29f   :  { %v361_v53 = vmul.f32 %v360_v51, %v302_v48  ;;  %v377_v0 = vsel %vm376_vm4, %v435_v35, %v373_v57 }
 0x2a0   :  { %v382_v5 = vsel %vm379_vm6, %v381_v1, %v377_v0 }
 0x2a1   :  { %v363_v56 = vmul.f32 %v361_v53, %v262_v26  ;;  %v362_v16 = vadd.f32 %v361_v53, %v815_v9 }
 0x2a3   :  { %v364_v61 = vmul.f32 %v363_v56, %v361_v53  ;;  %v387_v15 = vsub.f32 %v386_v19, %v362_v16 }
 0x2a5   :  { %v365_v63 = vsub.f32 %v344_v60, %v364_v61 }
 0x2a7   :  { %v366_v3 = vmax.f32 %v365_v63, 0.0 }
 0x2a9   :  { %v383_v6 = vmul.f32 %v382_v5, %v366_v3 }
 0x2ab   :  { %v388_v8 = vmul.f32 %v383_v6, %v213_v7 }
 0x2ad   :  { %v389_v10 = vadd.f32 1e-16, %v388_v8 }
 0x2af   :  { %436 = vrcp.f32 %v389_v10  ;;  %v401_v14 = vand.u32 2147483648, %v389_v10  ;;  %v399_v18 = vand.u32 2147483647, %v389_v10  ;;  %vm395_vm9 = vweird.f32 %v389_v10 }
 0x2b1   :  { %v402_v21 = vor.u32 1.1754944e-38, %v401_v14  ;;  %vm400_vm11 = vcmp.eq.f32.partialorder %v399_v18, 8.507059e+37 }
 0x2b5   :  { %v437_v11 = vpop.eup %436 }
 0x2b6   :  { %v391_v12 = vmul.f32 %v437_v11, %v389_v10  ;;  %vm396_vm8 = vweird.f32 %v437_v11 }
 0x2b7   :  { %vm397_vm10 = vmor %vm395_vm9, %vm396_vm8 }
 0x2b8   :  { %v392_v13 = vsub.f32 1.0, %v391_v12 }
 0x2ba   :  { %v393_v17 = vmul.f32 %v437_v11, %v392_v13 }
 0x2bc   :  { %v394_v20 = vadd.f32 %v437_v11, %v393_v17 }
 0x2be   :  { %v398_v22 = vsel %vm397_vm10, %v437_v11, %v394_v20 }
 0x2bf   :  { %v403_v23 = vsel %vm400_vm11, %v402_v21, %v398_v22 }
 0x2c0   :  { %v404_v24 = vmul.f32 %v403_v23, %v387_v15 }
 0x2c2   :  { %406 = vst.msk [vmem:[%s850_s4] sm:$0xff] %vm405_vm12, %v404_v24 }

</bundles_post_ra>
